<compile_context>
chip_gen: v5e
topology: v5e:2x2
jax: 0.10.0
libtpu: 0.0.40
codegen_flags: <defaults>
</compile_context>

<pallas_src>
import functools

import jax
import jax.numpy as jnp
from jax.experimental import pallas as pl
from jax.experimental.pallas import tpu as pltpu

BN_EPS = 1e-5
VMEM_LIMIT_BYTES = 64 * 1024 * 1024   # explicit budget, <= v7x physical VMEM (64 MiB)
DEFAULT_T_TILE = 256                  # target time-tile (rows, multiple of 8) for real sizes


# ----------------------------------------------------------------------------------------
# Pallas kernels
# ----------------------------------------------------------------------------------------
def _sep_repeat_kernel(*refs, K, stride, dilation, pad, T_in, Tt, residual, relu):
    """Fused: depthwise conv -> 1x1 conv (BN scale folded) -> +shift -> (+res 1x1+BN) -> ReLU."""
    if residual:
        (x_ref, dww_ref, pww_ref, shift_ref,
         rx_ref, rw_ref, rshift_ref, o_ref, xpad_ref) = refs
    else:
        x_ref, dww_ref, pww_ref, shift_ref, o_ref, xpad_ref = refs

    t = pl.program_id(1)

    # Build the zero-padded depthwise input once per batch element (t == 0); it stays in the
    # VMEM scratch for every time tile of this batch element (time axis is "arbitrary").
    @pl.when(t == 0)
    def _():
        xpad_ref[...] = jnp.zeros_like(xpad_ref)
        xpad_ref[pl.ds(pad, T_in), :] = x_ref[0].astype(jnp.float32)

    cin = xpad_ref.shape[1]
    base = t * (Tt * stride)              # first padded-input row needed by this output tile
    acc = jnp.zeros((Tt, cin), jnp.float32)
    for k in range(K):                    # K is small & static -> unrolled depthwise taps
        start = base + k * dilation
        if stride == 1:
            xs = xpad_ref[pl.ds(start, Tt), :]
        else:
            # strided ref read (documented replacement for a strided lax.slice copy)
            xs = xpad_ref[pl.ds(start, Tt, stride), :]
        acc = acc + xs * dww_ref[pl.ds(k, 1), :].astype(jnp.float32)

    # Pointwise conv as a single MXU matmul (BN scale already folded into the weight);
    # all biases + BN shift are pre-folded into shift_ref on the host.
    y = jnp.dot(acc.astype(pww_ref.dtype), pww_ref[...],
                preferred_element_type=jnp.float32)
    y = y + shift_ref[...].astype(jnp.float32)

    if residual:                          # fused residual 1x1 conv + BN (scale folded)
        y = y + jnp.dot(rx_ref[0].astype(rw_ref.dtype), rw_ref[...],
                        preferred_element_type=jnp.float32)
        y = y + rshift_ref[...].astype(jnp.float32)
    if relu:
        y = jnp.maximum(y, 0.0)
    o_ref[0] = y.astype(o_ref.dtype)


def _full_repeat_kernel(x_ref, w_ref, shift_ref, o_ref, *, K, Tt, relu):
    """Fused: Conv1d(kernel_size=K, padding=0, stride=1, dilation=1) -> BN affine -> ReLU."""
    t = pl.program_id(1)
    base = t * Tt
    cout = w_ref.shape[2]
    acc = jnp.zeros((Tt, cout), jnp.float32)
    # Accumulate with direct pl.ds window loads from the ref (no materialized full-x slices).
    for k in range(K):
        acc = acc + jnp.dot(x_ref[0, pl.ds(base + k, Tt), :], w_ref[k],
                            preferred_element_type=jnp.float32)
    y = acc + shift_ref[...].astype(jnp.float32)
    if relu:
        y = jnp.maximum(y, 0.0)
    o_ref[0] = y.astype(o_ref.dtype)


# ----------------------------------------------------------------------------------------
# pallas_call wrappers (grid = (batch, time tiles))
# ----------------------------------------------------------------------------------------
def _pick_t_tile(t_out, target):
    """Largest multiple of 8 that divides t_out and is <= target; else the full extent."""
    if t_out <= target:
        return t_out
    for cand in range(target - target % 8, 0, -8):
        if t_out % cand == 0:
            return cand
    return t_out


def sep_repeat(x, w_dw, w_pw, shift, *, K, stride, dilation, pad, T_out,
               res=None, relu=True, t_tile=DEFAULT_T_TILE):
    B, T_in, Cin = x.shape
    Cout = w_pw.shape[1]
    Tt = _pick_t_tile(T_out, t_tile)
    n_t = T_out // Tt
    residual = res is not None

    in_specs = [
        # depthwise input: per-batch resident block, revisited across time tiles
        pl.BlockSpec((1, T_in, Cin), lambda b, t: (b, 0, 0)),
        pl.BlockSpec((K, Cin), lambda b, t: (0, 0)),
        pl.BlockSpec((Cin, Cout), lambda b, t: (0, 0)),
        pl.BlockSpec((1, Cout), lambda b, t: (0, 0)),
    ]
    args = [x, w_dw, w_pw, shift]
    if residual:
        rx, rw, rshift = res
        assert rx.shape[1] == T_out, "residual length must match conv output length"
        Cx = rx.shape[2]
        in_specs += [
            pl.BlockSpec((1, Tt, Cx), lambda b, t: (b, t, 0)),
            pl.BlockSpec((Cx, Cout), lambda b, t: (0, 0)),
            pl.BlockSpec((1, Cout), lambda b, t: (0, 0)),
        ]
        args += [rx, rw, rshift]

    kernel = functools.partial(_sep_repeat_kernel, K=K, stride=stride, dilation=dilation,
                               pad=pad, T_in=T_in, Tt=Tt, residual=residual, relu=relu)
    return pl.pallas_call(
        kernel,
        out_shape=jax.ShapeDtypeStruct((B, T_out, Cout), x.dtype),
        grid=(B, n_t),
        in_specs=in_specs,
        out_specs=pl.BlockSpec((1, Tt, Cout), lambda b, t: (b, t, 0)),
        scratch_shapes=[pltpu.VMEM((T_in + 2 * pad, Cin), jnp.float32)],
        compiler_params=pltpu.CompilerParams(
            # time axis carries the scratch fill at t==0 -> keep it sequential;
            # batch axis is megacore-parallel.
            dimension_semantics=("parallel", "arbitrary"),
            vmem_limit_bytes=VMEM_LIMIT_BYTES),
    )(*args)


def full_repeat(x, w, shift, *, K, T_out, relu=True, t_tile=DEFAULT_T_TILE):
    B, T_in, Cin = x.shape
    Cout = w.shape[2]
    Tt = _pick_t_tile(T_out, t_tile)
    n_t = T_out // Tt
    kernel = functools.partial(_full_repeat_kernel, K=K, Tt=Tt, relu=relu)
    return pl.pallas_call(
        kernel,
        out_shape=jax.ShapeDtypeStruct((B, T_out, Cout), x.dtype),
        grid=(B, n_t),
        in_specs=[
            pl.BlockSpec((1, T_in, Cin), lambda b, t: (b, 0, 0)),
            pl.BlockSpec((K, Cin, Cout), lambda b, t: (0, 0, 0)),
            pl.BlockSpec((1, Cout), lambda b, t: (0, 0)),
        ],
        out_specs=pl.BlockSpec((1, Tt, Cout), lambda b, t: (b, t, 0)),
        compiler_params=pltpu.CompilerParams(
            dimension_semantics=("parallel", "parallel"),
            vmem_limit_bytes=VMEM_LIMIT_BYTES),
    )(x, w, shift)


# ----------------------------------------------------------------------------------------
# Model glue (parameter setup, BN/bias folding, block/network wiring)
# ----------------------------------------------------------------------------------------
def _fold_bn(bn):
    scale = bn["gamma"] / jnp.sqrt(bn["var"] + BN_EPS)
    shift = bn["beta"] - bn["mean"] * scale
    return scale, shift                      # each (C,)


def _init_bn(key, c):
    k1, k2, k3 = jax.random.split(key, 3)
    return dict(
        gamma=1.0 + 0.1 * jax.random.normal(k1, (c,), jnp.float32),
        beta=0.1 * jax.random.normal(k2, (c,), jnp.float32),
        mean=0.1 * jax.random.normal(k3, (c,), jnp.float32),
        var=jnp.ones((c,), jnp.float32),
    )


def init_block_params(key, feat_in, cfg, dtype=jnp.float32):
    # dtype=jnp.bfloat16 halves HBM traffic and uses the bf16 MXU path on v6e/v7x;
    # accumulation stays f32 inside the kernels.
    K, filters = cfg["kernel_size"], cfg["filters"]
    params = {}
    keys = jax.random.split(key, 6 * cfg["repeat"] + 4)
    ki = 0
    cin = feat_in
    for r in range(cfg["repeat"]):
        if cfg["separable"]:
            params[f"dw{r}_w"] = (0.1 * jax.random.normal(keys[ki], (K, cin))).astype(dtype); ki += 1
            params[f"dw{r}_b"] = 0.1 * jax.random.normal(keys[ki], (cin,), jnp.float32); ki += 1
            params[f"pw{r}_w"] = (0.1 * jax.random.normal(keys[ki], (cin, filters))).astype(dtype); ki += 1
            params[f"pw{r}_b"] = 0.1 * jax.random.normal(keys[ki], (filters,), jnp.float32); ki += 1
        else:
            params[f"conv{r}_w"] = (0.1 * jax.random.normal(keys[ki], (K, cin, filters))).astype(dtype); ki += 1
            params[f"conv{r}_b"] = 0.1 * jax.random.normal(keys[ki], (filters,), jnp.float32); ki += 1
        params[f"bn{r}"] = _init_bn(keys[ki], filters); ki += 1
        cin = filters
    if cfg["residual"]:
        params["res_w"] = (0.1 * jax.random.normal(keys[ki], (feat_in, filters))).astype(dtype); ki += 1
        params["res_b"] = 0.1 * jax.random.normal(keys[ki], (filters,), jnp.float32); ki += 1
        params["res_bn"] = _init_bn(keys[ki], filters); ki += 1
    return params


def block_forward(x, params, cfg, t_tile=DEFAULT_T_TILE):
    # x: (B, T, C) NLC.  Matches QuartzNetBlock.forward in eval mode.
    K, stride, dilation = cfg["kernel_size"], cfg["stride"], cfg["dilation"]
    # Same padding formula as the reference module constructor.
    pad = dilation * K // 2 - 1 if dilation > 1 else K // 2
    R = cfg["repeat"]
    separable = cfg["separable"]
    residual = cfg["residual"]

    if residual:
        rscale, rshift = _fold_bn(params["res_bn"])
        res_w = (params["res_w"].astype(jnp.float32) * rscale[None, :]).astype(params["res_w"].dtype)
        res_shift = (params["res_b"] * rscale + rshift)[None, :].astype(jnp.float32)

    y = x
    for r in range(R):
        last = r == R - 1
        scale, shift = _fold_bn(params[f"bn{r}"])
        if separable:
            # Fold BN scale into the pointwise weight; fold dw bias, pw bias and BN shift
            # into one per-channel shift so the kernel has no separate bias adds/inputs.
            w_pw_f32 = params[f"pw{r}_w"].astype(jnp.float32) * scale[None, :]
            shift_f = (params[f"dw{r}_b"] @ w_pw_f32
                       + params[f"pw{r}_b"] * scale + shift)[None, :].astype(jnp.float32)
            T_in = y.shape[1]
            T_out = (T_in + 2 * pad - dilation * (K - 1) - 1) // stride + 1
            # NOTE: stride/dilation/padding apply in every repetition, exactly as the
            # reference module builds its depthwise Conv1d layers.
            res = (x, res_w, res_shift) if (residual and last) else None
            y = sep_repeat(y, params[f"dw{r}_w"],
                           w_pw_f32.astype(params[f"pw{r}_w"].dtype), shift_f,
                           K=K, stride=stride, dilation=dilation, pad=pad, T_out=T_out,
                           res=res, relu=True, t_tile=t_tile)
        else:
            if residual and last:
                # TODO(synk): residual + non-separable conv shrinks T (padding=0 in the
                # reference), so the torch module itself cannot add them; not implemented.
                raise NotImplementedError("residual with non-separable conv")
            w_f = (params[f"conv{r}_w"].astype(jnp.float32)
                   * scale[None, None, :]).astype(params[f"conv{r}_w"].dtype)
            shift_f = (params[f"conv{r}_b"] * scale + shift)[None, :].astype(jnp.float32)
            # The reference passes no padding/stride/dilation to the non-separable Conv1d.
            T_out = y.shape[1] - (K - 1)
            y = full_repeat(y, w_f, shift_f, K=K, T_out=T_out, relu=True, t_tile=t_tile)
    return y


def quartznet_forward(features, features_length, params, conf, t_tile=DEFAULT_T_TILE):
    # features: (B, feat_in, T) -- PyTorch NCL.
    x = jnp.transpose(features, (0, 2, 1))               # -> (B, T, C) internal layout
    for block_params, bcfg in zip(params, conf["blocks"]):
        x = block_forward(x, block_params, bcfg, t_tile=t_tile)
    encoded = jnp.transpose(x, (0, 2, 1))                 # back to (B, C_out, T_out)
    stride_val = 1
    for bcfg in conf["blocks"]:
        stride_val *= bcfg["stride"] ** bcfg["repeat"]
    # TODO(synk): features_length is not used to mask padded frames (the reference forward
    # does not mask either); it only tracks stride-induced downsampling.
    encoded_len = (features_length - 1) // stride_val + 1
    return encoded, encoded_len


# ----------------------------------------------------------------------------------------
# Main
# ----------------------------------------------------------------------------------------
if __name__ == "__main__":
    conf = dict(
        feat_in=8,
        blocks=[
            dict(filters=16, repeat=2, kernel_size=3, stride=1, dilation=1,
                 residual=True, separable=True, dropout=0.0),
            dict(filters=16, repeat=1, kernel_size=5, stride=1, dilation=1,
                 residual=False, separable=False, dropout=0.0),
            dict(filters=16, repeat=1, kernel_size=5, stride=1, dilation=2,
                 residual=False, separable=True, dropout=0.0),
        ],
    )

    key = jax.random.PRNGKey(0)
    k_feat, *k_blocks = jax.random.split(key, 1 + len(conf["blocks"]))

    params = []
    feat_in = conf["feat_in"]
    for kb, bcfg in zip(k_blocks, conf["blocks"]):
        params.append(init_block_params(kb, feat_in, bcfg))
        feat_in = bcfg["filters"]

    B, C, T = 2, conf["feat_in"], 16
    features = jax.random.normal(k_feat, (B, C, T), jnp.float32)
    features_length = jnp.array([16, 12], dtype=jnp.int32)

    # t_tile=8 so even these toy shapes exercise the time-tiled grid path (use 256+ for real sizes).
    encoded, encoded_len = quartznet_forward(features, features_length, params, conf, t_tile=8)
    jax.block_until_ready(encoded)
    jax.block_until_ready(encoded_len)
    assert encoded.shape == (B, 16, 12), encoded.shape
    assert encoded_len.shape == (B,), encoded_len.shape
    print("KERNEL_OK")
</pallas_src>

<mosaic_0001>
module attributes {stable_mosaic.version = 11 : i64} {
  func.func @_sep_repeat_kernel(%arg0: i32, %arg1: i32, %arg2: memref<1x16x8xf32, #tpu.memory_space<vmem>>, %arg3: memref<3x8xf32, #tpu.memory_space<vmem>>, %arg4: memref<8x16xf32, #tpu.memory_space<vmem>>, %arg5: memref<1x16xf32, #tpu.memory_space<vmem>>, %arg6: memref<1x8x16xf32, #tpu.memory_space<vmem>>, %arg7: memref<18x8xf32, #tpu.memory_space<vmem>>) attributes {dimension_semantics = [#tpu.dimension_semantics<parallel>, #tpu.dimension_semantics<arbitrary>], iteration_bounds = array<i64: 2, 2>, scalar_prefetch = 0 : i64, scratch_operands = 1 : i64, tpu.core_type = #tpu.core_type<tc>, window_params = [{transform_indices = @transform_0, window_bounds = array<i64: 1, 16, 8>}, {pipeline_mode = #tpu.pipeline_mode<synchronous>, transform_indices = @transform_1, window_bounds = array<i64: 3, 8>}, {pipeline_mode = #tpu.pipeline_mode<synchronous>, transform_indices = @transform_2, window_bounds = array<i64: 8, 16>}, {pipeline_mode = #tpu.pipeline_mode<synchronous>, transform_indices = @transform_3, window_bounds = array<i64: 1, 16>}, {transform_indices = @transform_4, window_bounds = array<i64: 1, 8, 16>}]} {
    %c0_i32 = arith.constant 0 : i32
    %0 = arith.cmpi eq, %arg1, %c0_i32 : i32
    %1 = arith.extui %0 : i1 to i32
    %c0_i32_0 = arith.constant 0 : i32
    %2 = arith.cmpi ne, %1, %c0_i32_0 : i32
    scf.if %2 {
      %cst_17 = arith.constant 0.000000e+00 : f32
      %36 = vector.broadcast %cst_17 : f32 to vector<18x8xf32>
      %c0_18 = arith.constant 0 : index
      %c0_19 = arith.constant 0 : index
      %37 = vector.load %arg7[%c0_18, %c0_19] : memref<18x8xf32, #tpu.memory_space<vmem>>, vector<18x8xf32>
      tpu.vector_store %arg7[%c0_18, %c0_19], %36 {strides = array<i32>} : memref<18x8xf32, #tpu.memory_space<vmem>>, vector<18x8xf32>,
      %c0_20 = arith.constant 0 : index
      %c0_21 = arith.constant 0 : index
      %c0_22 = arith.constant 0 : index
      %38 = vector.load %arg2[%c0_20, %c0_21, %c0_22] : memref<1x16x8xf32, #tpu.memory_space<vmem>>, vector<1x16x8xf32>
      %39 = vector.shape_cast %38 : vector<1x16x8xf32> to vector<16x8xf32>
      %c1_23 = arith.constant 1 : index
      %c0_24 = arith.constant 0 : index
      %40 = vector.load %arg7[%c1_23, %c0_24] : memref<18x8xf32, #tpu.memory_space<vmem>>, vector<16x8xf32>
      tpu.vector_store %arg7[%c1_23, %c0_24], %39 {strides = array<i32>} : memref<18x8xf32, #tpu.memory_space<vmem>>, vector<16x8xf32>,
    } else {
    }
    %c8_i32 = arith.constant 8 : i32
    %3 = arith.muli %arg1, %c8_i32 : i32
    %cst = arith.constant 0.000000e+00 : f32
    %4 = vector.broadcast %cst : f32 to vector<8x8xf32>
    %c0_i32_1 = arith.constant 0 : i32
    %5 = arith.addi %3, %c0_i32_1 : i32
    %6 = arith.index_cast %5 : i32 to index
    %c0 = arith.constant 0 : index
    %7 = vector.load %arg7[%6, %c0] : memref<18x8xf32, #tpu.memory_space<vmem>>, vector<8x8xf32>
    %c0_2 = arith.constant 0 : index
    %c0_3 = arith.constant 0 : index
    %8 = vector.load %arg3[%c0_2, %c0_3] : memref<3x8xf32, #tpu.memory_space<vmem>>, vector<1x8xf32>
    %9 = vector.broadcast %8 : vector<1x8xf32> to vector<8x8xf32>
    %10 = arith.mulf %7, %9 : vector<8x8xf32>
    %11 = arith.addf %4, %10 : vector<8x8xf32>
    %c1_i32 = arith.constant 1 : i32
    %12 = arith.addi %3, %c1_i32 : i32
    %13 = arith.index_cast %12 : i32 to index
    %c0_4 = arith.constant 0 : index
    %14 = vector.load %arg7[%13, %c0_4] : memref<18x8xf32, #tpu.memory_space<vmem>>, vector<8x8xf32>
    %c1 = arith.constant 1 : index
    %c0_5 = arith.constant 0 : index
    %15 = vector.load %arg3[%c1, %c0_5] : memref<3x8xf32, #tpu.memory_space<vmem>>, vector<1x8xf32>
    %16 = vector.broadcast %15 : vector<1x8xf32> to vector<8x8xf32>
    %17 = arith.mulf %14, %16 : vector<8x8xf32>
    %18 = arith.addf %11, %17 : vector<8x8xf32>
    %c2_i32 = arith.constant 2 : i32
    %19 = arith.addi %3, %c2_i32 : i32
    %20 = arith.index_cast %19 : i32 to index
    %c0_6 = arith.constant 0 : index
    %21 = vector.load %arg7[%20, %c0_6] : memref<18x8xf32, #tpu.memory_space<vmem>>, vector<8x8xf32>
    %c2 = arith.constant 2 : index
    %c0_7 = arith.constant 0 : index
    %22 = vector.load %arg3[%c2, %c0_7] : memref<3x8xf32, #tpu.memory_space<vmem>>, vector<1x8xf32>
    %23 = vector.broadcast %22 : vector<1x8xf32> to vector<8x8xf32>
    %24 = arith.mulf %21, %23 : vector<8x8xf32>
    %25 = arith.addf %18, %24 : vector<8x8xf32>
    %c0_8 = arith.constant 0 : index
    %c0_9 = arith.constant 0 : index
    %26 = vector.load %arg4[%c0_8, %c0_9] : memref<8x16xf32, #tpu.memory_space<vmem>>, vector<8x16xf32>
    %cst_10 = arith.constant dense<0.000000e+00> : vector<8x16xf32>
    %27 = tpu.matmul %25, %26, %cst_10 {dimension_numbers = #tpu.dot_dimension_numbers<[1], [0], [0], [1], [0, 0, 1, 1], [], []>} : vector<8x8xf32>, vector<8x16xf32>, vector<8x16xf32> -> vector<8x16xf32>
    %c0_11 = arith.constant 0 : index
    %c0_12 = arith.constant 0 : index
    %28 = vector.load %arg5[%c0_11, %c0_12] : memref<1x16xf32, #tpu.memory_space<vmem>>, vector<1x16xf32>
    %29 = vector.broadcast %28 : vector<1x16xf32> to vector<8x16xf32>
    %30 = arith.addf %27, %29 : vector<8x16xf32>
    %cst_13 = arith.constant 0.000000e+00 : f32
    %31 = vector.broadcast %cst_13 : f32 to vector<8x16xf32>
    %32 = arith.maximumf %30, %31 : vector<8x16xf32>
    %c0_14 = arith.constant 0 : index
    %c0_15 = arith.constant 0 : index
    %c0_16 = arith.constant 0 : index
    %33 = vector.load %arg6[%c0_14, %c0_15, %c0_16] : memref<1x8x16xf32, #tpu.memory_space<vmem>>, vector<1x8x16xf32>
    %34 = vector.shape_cast %33 : vector<1x8x16xf32> to vector<8x16xf32>
    %35 = vector.shape_cast %32 : vector<8x16xf32> to vector<1x8x16xf32>
    tpu.vector_store %arg6[%c0_14, %c0_15, %c0_16], %35 {strides = array<i32>} : memref<1x8x16xf32, #tpu.memory_space<vmem>>, vector<1x8x16xf32>,
    return
  }
  func.func @transform_0(%arg0: i32, %arg1: i32) -> (i32, i32, i32) {
    %c0_i32 = arith.constant 0 : i32
    %c0_i32_0 = arith.constant 0 : i32
    %c0_i32_1 = arith.constant 0 : i32
    return %arg0, %c0_i32, %c0_i32_0 : i32, i32, i32
  }
  func.func @transform_1(%arg0: i32, %arg1: i32) -> (i32, i32) {
    %c0_i32 = arith.constant 0 : i32
    %c0_i32_0 = arith.constant 0 : i32
    %c0_i32_1 = arith.constant 0 : i32
    return %c0_i32, %c0_i32_0 : i32, i32
  }
  func.func @transform_2(%arg0: i32, %arg1: i32) -> (i32, i32) {
    %c0_i32 = arith.constant 0 : i32
    %c0_i32_0 = arith.constant 0 : i32
    %c0_i32_1 = arith.constant 0 : i32
    return %c0_i32, %c0_i32_0 : i32, i32
  }
  func.func @transform_3(%arg0: i32, %arg1: i32) -> (i32, i32) {
    %c0_i32 = arith.constant 0 : i32
    %c0_i32_0 = arith.constant 0 : i32
    %c0_i32_1 = arith.constant 0 : i32
    return %c0_i32, %c0_i32_0 : i32, i32
  }
  func.func @transform_4(%arg0: i32, %arg1: i32) -> (i32, i32, i32) {
    %c0_i32 = arith.constant 0 : i32
    %c0_i32_0 = arith.constant 0 : i32
    return %arg0, %arg1, %c0_i32 : i32, i32, i32
  }
}

</mosaic_0001>

<bundles_post_ra>
// kernel: tpu_custom_call.1
= control target key start
LH: loop header
LB: loop body
LE: loop exit
PB: predicated region body
PF: predicated region fallthrough
CT: control target
= control target key end

     0   :  { %9 = vsyncpa [#allocation4], 0  ;;  %s741_s0 = inlined_call_operand.vmem [shape: f32[2,16,8], index: 0, kind: input, shape index: {}]   ;;  %s742_s1 = inlined_call_operand.vmem [shape: f32[3,8], index: 1, kind: input, shape index: {}]   ;;  %s743_s2 = inlined_call_operand.vmem [shape: f32[8,16], index: 2, kind: input, shape index: {}]   ;;  %s744_s3 = inlined_call_operand.vmem [shape: f32[1,16], index: 3, kind: input, shape index: {}]   ;;  %s745_s4 = inlined_call_operand.hbm [shape: f32[2,16,16], index: 4, kind: output, shape index: {}]  }
   0x1   :  { %11 = vsyncpa [#allocation4 + $0x1], 0  ;;  %s593_s15 = smov 0   ;;  %s595_s16 = smov 0  }
   0x2   :  { %s597_s17 = smov 0   ;;  %s599_s18 = smov 0  }
   0x3   :  { %s601_s19 = smov 0   ;;  %s603_s20 = smov 0  }
   0x4   :  { %s605_s21 = smov 0   ;;  %s607_s22 = smov 0  }
   0x5 LB: > { %s374_s23 = sadd.s32 4294967295, %s565_s22   ;;  %s375_s24 = sadd.s32 4294967294, %s565_s22   ;;  %s565_s22 = sphi %s607_s22, %s17_s22   ;;  %s561_s21 = sphi %s605_s21, %s754_s21   ;;  %s557_s20 = sphi %s603_s20, %s753_s20   ;;  %s553_s19 = sphi %s601_s19, %s752_s19   ;;  %s549_s18 = sphi %s599_s18, %s751_s18   ;;  %s545_s17 = sphi %s597_s17, %s750_s17   ;;  %s541_s16 = sphi %s595_s16, %s749_s16   ;;  %s537_s15 = sphi %s593_s15, %s748_s15  }
   0x6   : > { %s26_s25 = sadd.s32 1, %s557_s20  ;;  %s29_s26 = sadd.s32 1, %s561_s21 }
   0x7   : > { %p27_p0 = scmp.ge.s32.totalorder %s26_s25, 2  ;;  %p137_p1 = scmp.ne.s32.totalorder %s545_s17, %s541_s16 }
   0x8   : > { %p138_p2 = scmp.eq.s32.totalorder %s374_s23, 3  ;;  %p143_p5 = scmp.ne.s32.totalorder %s541_s16, %s537_s15 }
   0x9   : > { %s756_s25 = smov (%p27_p0, %s26_s25), 0  ;;  %s758_s26 = smov (!%p27_p0, %s29_s26), %s561_s21 }
   0xa   : > { %s123_s27 = ssub.s32 %s557_s20, %s756_s25  ;;  %p644_p3 = por %p138_p2, %p137_p1 }
   0xb   : > { %p31_p4 = scmp.ge.s32.totalorder %s758_s26, 2  ;;  %p144_p6 = scmp.eq.s32.totalorder %s375_s24, 3 }
   0xc   : > { %p378_p7 = scmp.ge.s32.totalorder %s565_s22, 1  ;;  %p179_p9 = scmp.lt.s32.totalorder %s565_s22, 5 }
   0xd   : > { %s760_s26 = smov (%p31_p4, %s758_s26), 0  ;;  %p653_p8 = por %p144_p6, %p143_p5 }
   0xe   : > { %s122_s30 = ssub.s32 %s561_s21, %s760_s26  ;;  %s127_s5 = sadd.s32 1, %s545_s17 }
   0xf   : > { %s124_s6 = sor.u32 %s123_s27, %s122_s30  ;;  %p180_p10 = pnand %p378_p7, %p179_p9 }
  0x10   : > { %p125_p11 = scmp.eq.s32.totalorder %s124_s6, 0  ;;  %s202_s8 = sand.u32 (!%p180_p10), 1, %s541_s16  }
  0x11   : > { %183 = sbr.rel (%p180_p10) target bundleno = 181 (0xb5), region = 36  ;;  %p205_p12 = scmp.lt.s32.totalorder (!%p180_p10), %s553_s19, 1 }
  0x12   : > { %s662_s7 = scalar_select %p125_p11, %s545_s17, %s127_s5  }
  0x13   : > { %s668_s9 = sshll.u32 (!%p180_p10), %s202_s8, 3  ;;  %p382_p13 = scmp.ne.s32.totalorder (!%p180_p10), %s549_s18, 0 }
  0x14   : > { %s204_s23 = scalar_lea.vmem (!%p180_p10), [#allocation3], %s668_s9 }
  0x16   : > { %s206_s10 = scalar_select %p205_p12, %s553_s19, 1 }
  0x17   : > { %213 = sbr.rel (%p382_p13) target bundleno = 34 (0x22), region = 40 }
  0x18   : > { %s394_s11 = sshll.u32 %s206_s10, 4 }
  0x19   : > { %s209_s14 = scalar_lea.vmem %s741_s0, %s394_s11 }
  0x1c   : > { %vm214_vm0 = vcmask 64512   ;;  %vm217_vm1 = vcmask 58368   ;;  %v567_v0 = vmov 0.0   ;;  %v219_v1 = vld [vmem:[%s209_s14] sm:$0xff]  ;;  %v220_v2 = vld [vmem:[%s209_s14 + $0x8] sm:$0xff] }
  0x1d   : > { %215 = vst.msk [vmem:[#allocation2] sm:$0xff] %vm214_vm0, %v567_v0 }
  0x1e   : > { %216 = vst.msk [vmem:[#allocation2 + $0x8] sm:$0xff] %vm214_vm0, %v567_v0 }
  0x1f   : > { %218 = vst.msk [vmem:[#allocation2 + $0x10] sm:$0x3] %vm217_vm1, %v567_v0 }
  0x20   : > { %221 = vst.msk [vmem:[#allocation2 + $0x1] sm:$0xff] %vm214_vm0, %v219_v1 }
  0x21   : > { %222 = vst.msk [vmem:[#allocation2 + $0x9] sm:$0xff] %vm214_vm0, %v220_v2 }
  0x22 PF: > { %v244_v3 = vld [vmem:[%s743_s2] sm:$0xff]  ;;  %s383_s30 = sshll.u32 %s549_s18, 3  ;;  %vm249_vm2 = vcmask 64512   ;;  %s390_s24 = sshll.u32 %s553_s19, 1  ;;  %vm274_vm3 = vcmask 130048  }
  0x23   : > { %v467_v4 = vld [vmem:[%s742_s1] ss:$0 sm:$0xff]  ;;  %268 = vmatpush.msra.mxu0 %v244_v3  ;;  %v468_v5 = vld [vmem:[%s742_s1 + $0x1] ss:$0 sm:$0xff]  ;;  %s224_s12 = scalar_lea.vmem [#allocation2], %s383_s30  ;;  %s287_s27 = sadd.s32 %s549_s18, %s390_s24 }
  0x24   : > { %v469_v11 = vld [vmem:[%s742_s1 + $0x2] ss:$0 sm:$0xff]  ;;  %s391_s30 = sshll.u32 %s287_s27, 3  ;;  %v470_v15 = vld [vmem:[%s744_s3] ss:$0 sm:$0xff]  ;;  %s291_s13 = sshll.u32 %s204_s23, 4  ;;  %s292_s13 = int_to_ptr.vmem [resolvable:$true] %s291_s13 }
  0x25   : > { %s277_s18 = scalar_lea.sflag [#allocation4], %s202_s8  ;;  %s491_s5 = scalar_lea.hbm %s745_s4, 32 }
  0x28   : > { %v225_v6 = vld [vmem:[%s224_s12] sm:$0xff] }
  0x29   : > { %v385_v7 = vld [vmem:[%s224_s12 + $0x1] sm:$0xff]  ;;  %v228_v9 = vmul.f32 %v467_v4, %v225_v6 }
  0x2a   : > { %v387_v8 = vld [vmem:[%s224_s12 + $0x2] sm:$0xff]  ;;  %v235_v10 = vmul.f32 %v468_v5, %v385_v7  ;;  %s289_s12 = scalar_lea.hbm %s745_s4, %s391_s30 }
  0x2b   : > { %v242_v13 = vmul.f32 %v469_v11, %v387_v8  ;;  %s293_s14 = sshll.u32 %s289_s12, 4  ;;  %s294_s14 = int_to_ptr.hbm [resolvable:$true] %s293_s14 }
  0x2c   : > { %v236_v12 = vadd.f32 %v235_v10, %v228_v9  ;;  %s485_s19 = sshra.s32 %s294_s14, 4  ;;  %s486_s19 = int_to_ptr.hbm [resolvable:$true] %s485_s19 }
  0x2d   : > { %s487_s24 = scalar_lea.hbm %s486_s19, 8  ;;  %p492_p4 = scmp.lt.s32.totalorder %s486_s19, %s745_s4 }
  0x2e   : > { %v243_v14 = vadd.f32 %v242_v13, %v236_v12  ;;  %p488_p0 = scmp.ne.s32.totalorder %s486_s19, %s487_s24  ;;  %p493_p5 = scmp.lt.s32.totalorder %s491_s5, %s487_s24 }
  0x30   : > { %388 = vmatmul.msk.f32.vlgmr.msra.gmra.mxu0 %vm249_vm2, %v243_v14  ;;  %p489_p1 = pnand %p488_p0, %p644_p3  ;;  %p494_p6 = por %p493_p5, %p492_p4 }
  0x32   : > { %p490_p2 = pneg %p489_p1 }
  0x34   : > { %p495_p7 = pnand %p494_p6, %p490_p2 }
  0xad   : > { %v270_v16 = vpop.f32.mrf.mxu0 }
  0xae   : > { %v271_v17 = vadd.f32 %v470_v15, %v270_v16 }
  0xb0   : > { %v273_v18 = vmax.f32 %v271_v17, 0.0 }
  0xb2   : > { %275 = vst.msk [vmem:[%s204_s23] sm:$0xff] %vm274_vm3, %v273_v18 }
  0xb3   : > { %498 = shalt.err (!%p495_p7)
}
  0xb4   : > { %395 = dma.vmem_to_hbm [thread:$0]  (%p644_p3), %s292_s13, 128, %s294_s14, %s277_s18  }
  0xb5 PF: > { %p401_p9 = scmp.ge.s32.totalorder %s565_s22, 2  ;;  %s305_s8 = sand.u32 1, %s537_s15  }
  0xb6   : > { %s306_s9 = scalar_lea.sflag [#allocation4], %s305_s8 }
  0xb7   : > { %p398_p10 = pnand %p401_p9, %p653_p8 }
  0xb9   : > { %p399_p11 = pneg %p398_p10 }
  0xbb   : > { %532 = dma.done.wait (%p399_p11), %s306_s9, 128  }
  0xbc   : > { %534 = vsyncadd (%p399_p11), %s306_s9, 4294967168  ;;  %s17_s22 = sadd.s32 1, %s565_s22   ;;  %s748_s15 = smov %s541_s16 }
  0xbd   : > { %p14_p12 = scmp.ge.s32.totalorder %s17_s22, 6   ;;  %s749_s16 = smov %s545_s17 }
  0xbe   : > { %s750_s17 = smov %s662_s7  ;;  %s751_s18 = smov %s557_s20 }
  0xbf   : > { %s752_s19 = smov %s561_s21  ;;  %s753_s20 = smov %s756_s25 }
  0xc0   : > { %s754_s21 = smov %s760_s26  ;;  %16 = sbr.rel (!%p14_p12) target bundleno = 5 (0x5), region = 78 }
  0xc5   :  { %312 = vsyncpa [#allocation4], 1 }
  0xc6   :  { %314 = vsyncpa [#allocation4 + $0x1], 1 }

</bundles_post_ra>
